<compile_context>
chip_gen: v7x
topology: tpu7x:2x2x1
jax: 0.10.0
libtpu: 0.0.40
codegen_flags: <defaults>
</compile_context>

<pallas_src>
import jax
import jax.numpy as jnp
import numpy as np
from jax.experimental import pallas as pl
from jax.experimental.pallas import tpu as pltpu


# ---------------------------------------------------------------------------
# Kernel
# ---------------------------------------------------------------------------
def _prefix_enc_kernel(seg_ids_ref, emb_ref, w1_ref, b1_ref,
                       w2k_ref, w2v_ref, b2k_ref, b2v_ref,
                       k_ref, v_ref):
    # seg_ids_ref: (n,) int32 in SMEM (scalar prefetch; consumed by index_maps)
    # emb_ref:(1,P,D) bf16  w1_ref:(1,D,H) bf16  b1_ref:(1,1,H) f32
    # w2k_ref/w2v_ref:(1,H,TN) bf16  b2k_ref/b2v_ref:(1,1,TN) f32
    # k_ref/v_ref:(1,P,TN) out_dtype
    del seg_ids_ref  # only used by the index_maps

    # Tiny first matmul + f32 epilogue.  Recomputed per feature tile on purpose:
    # compute has enormous slack and this keeps the j axis safely parallel.
    h = jnp.dot(emb_ref[0], w1_ref[0], preferred_element_type=jnp.float32)
    h = jnp.tanh(h + b1_ref[0])                     # (P, H) f32 (EUP tanh)
    h = h.astype(w2k_ref.dtype)                     # bf16 operand for the MXU

    # Dominant (HBM-bound) matmuls: one (H, TN) tile of W2_k and W2_v per step.
    k = jnp.dot(h, w2k_ref[0], preferred_element_type=jnp.float32) + b2k_ref[0]
    v = jnp.dot(h, w2v_ref[0], preferred_element_type=jnp.float32) + b2v_ref[0]
    k_ref[0] = k.astype(k_ref.dtype)
    v_ref[0] = v.astype(v_ref.dtype)


# ---------------------------------------------------------------------------
# VMEM budget / tile selection
# ---------------------------------------------------------------------------
def _vmem_limit_bytes(default_bytes=32 << 20):
    """Generation-aware scoped-VMEM budget.

    v7x only has 64 MiB physical VMEM (v5e/v6e: 128 MiB); derive the scoped
    limit from the hardware query and fall back to a universally-safe 32 MiB.
    """
    try:
        info = pltpu.get_tpu_info()
        phys = getattr(info, "vmem_capacity_bytes", None)
        if not phys:
            return default_bytes
        return int(min(phys * 5 // 8, 80 << 20))   # ~40 MiB on v7x, 80 MiB on v5e/v6e
    except Exception:
        return default_bytes


def _pick_tile_n(LE, H, P, w2_itemsize, out_itemsize, vmem_limit):
    """Largest feature tile TN (multiple of 128, dividing L*E) whose
    double-buffered streamed set (W2_k + W2_v + b2_k + b2_v + K + V tiles)
    fits ~75% of the VMEM budget, capped at ~8 MiB per W2 stream buffer."""
    if LE <= 128 or LE % 128 != 0:
        return LE
    budget = int(vmem_limit * 0.75)
    # bytes per output column, per grid step, x2 for double buffering:
    per_col = 2 * (2 * H * w2_itemsize + 2 * 4 + 2 * P * out_itemsize)
    max_tn = max(128, (budget // per_col) // 128 * 128)
    cap_tn = max(128, ((8 << 20) // (H * w2_itemsize)) // 128 * 128)
    tn = min(max_tn, cap_tn, LE)
    tn = tn // 128 * 128
    while tn > 128 and LE % tn != 0:
        tn -= 128
    return tn if (tn >= 128 and LE % tn == 0) else LE


# ---------------------------------------------------------------------------
# Pallas wrapper
# ---------------------------------------------------------------------------
def prefix_enc_pallas(seg_ids, params, *, tile_n=None, out_dtype=jnp.float32,
                      core_parallel_j=False):
    """seg_ids: (n,) int32 indices of attached segments.
    params: prepared dict (see prepare_prefix_params) with
      wte:(S,P,D) bf16, w1:(S,D,H) bf16, b1:(S,1,H) f32,
      w2k/w2v:(S,H,L*E) bf16, b2k/b2v:(S,1,L*E) f32.
    Returns (K, V), each (n, P, L*E) in out_dtype."""
    n = seg_ids.shape[0]
    S, P, D = params["wte"].shape
    H = params["w1"].shape[-1]
    LE = params["w2k"].shape[-1]

    vmem_limit = _vmem_limit_bytes()
    if tile_n is None:
        tile_n = _pick_tile_n(LE, H, P,
                              jnp.dtype(params["w2k"].dtype).itemsize,
                              jnp.dtype(out_dtype).itemsize,
                              vmem_limit)
    assert LE % tile_n == 0, (LE, tile_n)
    grid = (n, LE // tile_n)

    # index_maps receive (s, j, *prefetch_refs); seg_ids lives in SMEM.
    def seg_map(s, j, ids):   # emb / w1 / b1: constant across j -> VMEM resident
        return (ids[s], 0, 0)

    def feat_map(s, j, ids):  # w2k / w2v / b2k / b2v: new feature tile per j
        return (ids[s], 0, j)

    def out_map(s, j, ids):   # compact output: row s (not ids[s]), tile j
        return (s, 0, j)

    # v7x-only lever: explicitly shard the feature stream across both
    # TensorCores.  Off by default -- verify with a profile before enabling.
    j_sem = pltpu.CORE_PARALLEL if core_parallel_j else "parallel"

    return pl.pallas_call(
        _prefix_enc_kernel,
        out_shape=(jax.ShapeDtypeStruct((n, P, LE), out_dtype),
                   jax.ShapeDtypeStruct((n, P, LE), out_dtype)),
        grid_spec=pltpu.PrefetchScalarGridSpec(
            num_scalar_prefetch=1,
            grid=grid,
            in_specs=[
                pl.BlockSpec((1, P, D), seg_map),
                pl.BlockSpec((1, D, H), seg_map),
                pl.BlockSpec((1, 1, H), seg_map),
                pl.BlockSpec((1, H, tile_n), feat_map),
                pl.BlockSpec((1, H, tile_n), feat_map),
                pl.BlockSpec((1, 1, tile_n), feat_map),
                pl.BlockSpec((1, 1, tile_n), feat_map),
            ],
            out_specs=[pl.BlockSpec((1, P, tile_n), out_map),
                       pl.BlockSpec((1, P, tile_n), out_map)],
        ),
        compiler_params=pltpu.CompilerParams(
            dimension_semantics=("parallel", j_sem),
            vmem_limit_bytes=vmem_limit,
        ),
    )(seg_ids, params["wte"], params["w1"], params["b1"],
      params["w2k"], params["w2v"], params["b2k"], params["b2v"])


# ---------------------------------------------------------------------------
# Parameters (raw PyTorch-layout, stacked over segments) + kernel-ready prep
# ---------------------------------------------------------------------------
def init_prefix_tuning_params(key, *, prompt_num, embed_dim, hidden_dim,
                              pri_dim, seg_num, layer_num):
    """Deterministic synthetic f32 parameters (shapes match the PyTorch module),
    pre-stacked along a leading segment axis.  Linear weights stored (in, out)."""
    out_dim = 2 * embed_dim * layer_num
    k = jax.random.split(key, 5)
    wte = jax.random.normal(k[0], (seg_num, prompt_num, pri_dim), jnp.float32)
    w1 = (jax.random.normal(k[1], (seg_num, pri_dim, hidden_dim), jnp.float32)
          * (1.0 / np.sqrt(pri_dim)))
    b1 = jax.random.normal(k[2], (seg_num, 1, hidden_dim), jnp.float32) * 0.01
    w2 = (jax.random.normal(k[3], (seg_num, hidden_dim, out_dim), jnp.float32)
          * (1.0 / np.sqrt(hidden_dim)))
    b2 = jax.random.normal(k[4], (seg_num, 1, out_dim), jnp.float32) * 0.01
    return dict(wte=wte, w1=w1, b1=b1, w2=w2, b2=b2)


def prepare_prefix_params(raw, *, embed_dim, layer_num,
                          weight_dtype=jnp.bfloat16):
    """One-time layout/dtype prep: split the interleaved W2/b2 columns into
    K and V slabs (so the kernel emits K and V directly, no post-split copy)
    and cast the streamed weights to bf16 (halves HBM bytes; f32 biases)."""
    S, H, O = raw["w2"].shape
    E, L = embed_dim, layer_num
    assert O == 2 * E * L, (O, E, L)
    w2 = raw["w2"].reshape(S, H, L, 2, E)
    b2 = raw["b2"].reshape(S, 1, L, 2, E)
    return dict(
        wte=raw["wte"].astype(weight_dtype),
        w1=raw["w1"].astype(weight_dtype),
        b1=raw["b1"].astype(jnp.float32),
        w2k=w2[:, :, :, 0, :].reshape(S, H, L * E).astype(weight_dtype),
        w2v=w2[:, :, :, 1, :].reshape(S, H, L * E).astype(weight_dtype),
        b2k=b2[:, :, :, 0, :].reshape(S, 1, L * E).astype(jnp.float32),
        b2v=b2[:, :, :, 1, :].reshape(S, 1, L * E).astype(jnp.float32),
    )


# ---------------------------------------------------------------------------
# Forward (mirrors PrefixTuning.forward)
# ---------------------------------------------------------------------------
def prefix_tuning_forward(prepared, attach, *, prompt_num, embed_dim, layer_num,
                          seg_num, training=False, tile_n=None,
                          out_dtype=jnp.float32, cache=None):
    """Returns (key, value), each (n*P, L, E), or None on the early-exit path.

    The output depends only on the parameters and the attach mask, so pass a
    dict as `cache` to reuse results across decode steps (removes the whole
    W2 HBM stream from the per-token path)."""
    if attach is None or not any(attach[:seg_num]) or prompt_num == 0:
        return None
    key = tuple(bool(a) for a in attach[:seg_num])
    if cache is not None and key in cache:
        return cache[key]

    seg_ids = jnp.asarray([i for i in range(seg_num) if attach[i]],
                          dtype=jnp.int32)
    K, V = prefix_enc_pallas(seg_ids, prepared, tile_n=tile_n,
                             out_dtype=out_dtype)
    # F.dropout(training=False) is an identity; inference path assumed.
    n = seg_ids.shape[0]
    out = (K.reshape(n * prompt_num, layer_num, embed_dim),
           V.reshape(n * prompt_num, layer_num, embed_dim))
    if cache is not None:
        cache[key] = out
    return out


def _reference_forward(raw, attach, *, embed_dim, layer_num, seg_num,
                       weight_dtype=jnp.bfloat16):
    """Pure-JAX reference following the PyTorch structure exactly (interleaved
    W2, full kv, view, split), mirroring the kernel's precision choices
    (bf16-stored weights, f32 accumulation/epilogue, bf16 h for matmul2)."""
    if attach is None or not any(attach[:seg_num]):
        return None
    outs = []
    for i in range(seg_num):
        if not attach[i]:
            continue
        x = raw["wte"][i].astype(weight_dtype).astype(jnp.float32)
        w1 = raw["w1"][i].astype(weight_dtype).astype(jnp.float32)
        h = jnp.tanh(x @ w1 + raw["b1"][i])
        h = h.astype(weight_dtype).astype(jnp.float32)
        w2 = raw["w2"][i].astype(weight_dtype).astype(jnp.float32)
        outs.append(h @ w2 + raw["b2"][i])
    kv = jnp.concatenate(outs, axis=0).reshape(-1, layer_num, 2 * embed_dim)
    return kv[..., :embed_dim], kv[..., embed_dim:]


# ---------------------------------------------------------------------------
# Self-test
# ---------------------------------------------------------------------------
if __name__ == "__main__":
    # Small, shape-consistent config.
    PROMPT_NUM = 8      # P
    EMBED_DIM = 32      # E
    HIDDEN_DIM = 64     # H
    PRI_DIM = 64        # D
    SEG_NUM = 2         # S
    LAYER_NUM = 8       # L   -> L*E = 256, O = 2*E*L = 512

    key = jax.random.PRNGKey(0)
    raw = init_prefix_tuning_params(
        key, prompt_num=PROMPT_NUM, embed_dim=EMBED_DIM, hidden_dim=HIDDEN_DIM,
        pri_dim=PRI_DIM, seg_num=SEG_NUM, layer_num=LAYER_NUM)
    prepared = prepare_prefix_params(raw, embed_dim=EMBED_DIM,
                                     layer_num=LAYER_NUM)

    # Case 1: both segments attached, auto tile size.
    attach = [True, True]
    k_out, v_out = prefix_tuning_forward(
        prepared, attach, prompt_num=PROMPT_NUM, embed_dim=EMBED_DIM,
        layer_num=LAYER_NUM, seg_num=SEG_NUM, training=False)
    jax.block_until_ready((k_out, v_out))

    k_ref, v_ref = _reference_forward(
        raw, attach, embed_dim=EMBED_DIM, layer_num=LAYER_NUM, seg_num=SEG_NUM)

    assert k_out.shape == (SEG_NUM * PROMPT_NUM, LAYER_NUM, EMBED_DIM)
    assert v_out.shape == (SEG_NUM * PROMPT_NUM, LAYER_NUM, EMBED_DIM)
    np.testing.assert_allclose(np.asarray(k_out), np.asarray(k_ref),
                               rtol=1e-4, atol=1e-4)
    np.testing.assert_allclose(np.asarray(v_out), np.asarray(v_ref),
                               rtol=1e-4, atol=1e-4)

    # Case 2: only segment 1 attached, forced feature tiling (2 tiles of 128):
    # exercises the scalar-prefetched segment gather + the tiled W2_k/W2_v streams.
    attach2 = [False, True]
    k2, v2 = prefix_tuning_forward(
        prepared, attach2, prompt_num=PROMPT_NUM, embed_dim=EMBED_DIM,
        layer_num=LAYER_NUM, seg_num=SEG_NUM, training=False, tile_n=128)
    jax.block_until_ready((k2, v2))
    k2_ref, v2_ref = _reference_forward(
        raw, attach2, embed_dim=EMBED_DIM, layer_num=LAYER_NUM, seg_num=SEG_NUM)
    assert k2.shape == (PROMPT_NUM, LAYER_NUM, EMBED_DIM)
    np.testing.assert_allclose(np.asarray(k2), np.asarray(k2_ref),
                               rtol=1e-4, atol=1e-4)
    np.testing.assert_allclose(np.asarray(v2), np.asarray(v2_ref),
                               rtol=1e-4, atol=1e-4)

    # Case 3: bf16 output (downstream-consumes-bf16 path), looser tolerance.
    k3, v3 = prefix_tuning_forward(
        prepared, attach, prompt_num=PROMPT_NUM, embed_dim=EMBED_DIM,
        layer_num=LAYER_NUM, seg_num=SEG_NUM, training=False,
        out_dtype=jnp.bfloat16)
    jax.block_until_ready((k3, v3))
    assert k3.dtype == jnp.bfloat16
    np.testing.assert_allclose(np.asarray(k3, dtype=np.float32),
                               np.asarray(k_ref), rtol=2e-2, atol=2e-2)

    # Case 4: per-attach-config result caching (removes the W2 stream from the
    # per-decode-step path).
    cache = {}
    a1 = prefix_tuning_forward(prepared, attach, prompt_num=PROMPT_NUM,
                               embed_dim=EMBED_DIM, layer_num=LAYER_NUM,
                               seg_num=SEG_NUM, cache=cache)
    a2 = prefix_tuning_forward(prepared, attach, prompt_num=PROMPT_NUM,
                               embed_dim=EMBED_DIM, layer_num=LAYER_NUM,
                               seg_num=SEG_NUM, cache=cache)
    assert a1[0] is a2[0] and a1[1] is a2[1]

    # attach=None / all-False path returns None (matches PyTorch early exit).
    assert prefix_tuning_forward(prepared, None, prompt_num=PROMPT_NUM,
                                 embed_dim=EMBED_DIM, layer_num=LAYER_NUM,
                                 seg_num=SEG_NUM) is None
    assert prefix_tuning_forward(prepared, [False, False], prompt_num=PROMPT_NUM,
                                 embed_dim=EMBED_DIM, layer_num=LAYER_NUM,
                                 seg_num=SEG_NUM) is None

    print("KERNEL_OK")
</pallas_src>

<mosaic_0001>
module attributes {stable_mosaic.version = 11 : i64} {
  func.func @_prefix_enc_kernel(%arg0: i32, %arg1: i32, %arg2: memref<2xi32, #tpu.memory_space<smem>>, %arg3: memref<1x8x64xbf16, #tpu.memory_space<vmem>>, %arg4: memref<1x64x64xbf16, #tpu.memory_space<vmem>>, %arg5: memref<1x1x64xf32, #tpu.memory_space<vmem>>, %arg6: memref<1x64x256xbf16, #tpu.memory_space<vmem>>, %arg7: memref<1x64x256xbf16, #tpu.memory_space<vmem>>, %arg8: memref<1x1x256xf32, #tpu.memory_space<vmem>>, %arg9: memref<1x1x256xf32, #tpu.memory_space<vmem>>, %arg10: memref<1x8x256xf32, #tpu.memory_space<vmem>>, %arg11: memref<1x8x256xf32, #tpu.memory_space<vmem>>) attributes {dimension_semantics = [#tpu.dimension_semantics<parallel>, #tpu.dimension_semantics<parallel>], iteration_bounds = array<i64: 2, 1>, scalar_prefetch = 1 : i64, scratch_operands = 0 : i64, tpu.core_type = #tpu.core_type<tc>, window_params = [{transform_indices = @transform_0, window_bounds = array<i64: 1, 8, 64>}, {transform_indices = @transform_1, window_bounds = array<i64: 1, 64, 64>}, {transform_indices = @transform_2, window_bounds = array<i64: 1, 1, 64>}, {transform_indices = @transform_3, window_bounds = array<i64: 1, 64, 256>}, {transform_indices = @transform_4, window_bounds = array<i64: 1, 64, 256>}, {transform_indices = @transform_5, window_bounds = array<i64: 1, 1, 256>}, {transform_indices = @transform_6, window_bounds = array<i64: 1, 1, 256>}, {transform_indices = @transform_7, window_bounds = array<i64: 1, 8, 256>}, {transform_indices = @transform_8, window_bounds = array<i64: 1, 8, 256>}]} {
    %c0 = arith.constant 0 : index
    %c0_0 = arith.constant 0 : index
    %c0_1 = arith.constant 0 : index
    %0 = vector.load %arg3[%c0, %c0_0, %c0_1] : memref<1x8x64xbf16, #tpu.memory_space<vmem>>, vector<1x8x64xbf16>
    %1 = vector.shape_cast %0 : vector<1x8x64xbf16> to vector<8x64xbf16>
    %c0_2 = arith.constant 0 : index
    %c0_3 = arith.constant 0 : index
    %c0_4 = arith.constant 0 : index
    %2 = vector.load %arg4[%c0_2, %c0_3, %c0_4] : memref<1x64x64xbf16, #tpu.memory_space<vmem>>, vector<1x64x64xbf16>
    %3 = vector.shape_cast %2 : vector<1x64x64xbf16> to vector<64x64xbf16>
    %cst = arith.constant dense<0.000000e+00> : vector<8x64xf32>
    %4 = tpu.matmul %1, %3, %cst {dimension_numbers = #tpu.dot_dimension_numbers<[1], [0], [0], [1], [0, 0, 1, 1], [], []>} : vector<8x64xbf16>, vector<64x64xbf16>, vector<8x64xf32> -> vector<8x64xf32>
    %c0_5 = arith.constant 0 : index
    %c0_6 = arith.constant 0 : index
    %c0_7 = arith.constant 0 : index
    %5 = vector.load %arg5[%c0_5, %c0_6, %c0_7] : memref<1x1x64xf32, #tpu.memory_space<vmem>>, vector<1x1x64xf32>
    %6 = vector.shape_cast %5 : vector<1x1x64xf32> to vector<1x64xf32>
    %7 = vector.broadcast %6 : vector<1x64xf32> to vector<8x64xf32>
    %8 = arith.addf %4, %7 : vector<8x64xf32>
    %9 = math.tanh %8 : vector<8x64xf32>
    %10 = arith.truncf %9 : vector<8x64xf32> to vector<8x64xbf16>
    %c0_8 = arith.constant 0 : index
    %c0_9 = arith.constant 0 : index
    %c0_10 = arith.constant 0 : index
    %11 = vector.load %arg6[%c0_8, %c0_9, %c0_10] : memref<1x64x256xbf16, #tpu.memory_space<vmem>>, vector<1x64x256xbf16>
    %12 = vector.shape_cast %11 : vector<1x64x256xbf16> to vector<64x256xbf16>
    %cst_11 = arith.constant dense<0.000000e+00> : vector<8x256xf32>
    %13 = tpu.matmul %10, %12, %cst_11 {dimension_numbers = #tpu.dot_dimension_numbers<[1], [0], [0], [1], [0, 0, 1, 1], [], []>} : vector<8x64xbf16>, vector<64x256xbf16>, vector<8x256xf32> -> vector<8x256xf32>
    %c0_12 = arith.constant 0 : index
    %c0_13 = arith.constant 0 : index
    %c0_14 = arith.constant 0 : index
    %14 = vector.load %arg8[%c0_12, %c0_13, %c0_14] : memref<1x1x256xf32, #tpu.memory_space<vmem>>, vector<1x1x256xf32>
    %15 = vector.shape_cast %14 : vector<1x1x256xf32> to vector<1x256xf32>
    %16 = vector.broadcast %15 : vector<1x256xf32> to vector<8x256xf32>
    %17 = arith.addf %13, %16 : vector<8x256xf32>
    %c0_15 = arith.constant 0 : index
    %c0_16 = arith.constant 0 : index
    %c0_17 = arith.constant 0 : index
    %18 = vector.load %arg7[%c0_15, %c0_16, %c0_17] : memref<1x64x256xbf16, #tpu.memory_space<vmem>>, vector<1x64x256xbf16>
    %19 = vector.shape_cast %18 : vector<1x64x256xbf16> to vector<64x256xbf16>
    %cst_18 = arith.constant dense<0.000000e+00> : vector<8x256xf32>
    %20 = tpu.matmul %10, %19, %cst_18 {dimension_numbers = #tpu.dot_dimension_numbers<[1], [0], [0], [1], [0, 0, 1, 1], [], []>} : vector<8x64xbf16>, vector<64x256xbf16>, vector<8x256xf32> -> vector<8x256xf32>
    %c0_19 = arith.constant 0 : index
    %c0_20 = arith.constant 0 : index
    %c0_21 = arith.constant 0 : index
    %21 = vector.load %arg9[%c0_19, %c0_20, %c0_21] : memref<1x1x256xf32, #tpu.memory_space<vmem>>, vector<1x1x256xf32>
    %22 = vector.shape_cast %21 : vector<1x1x256xf32> to vector<1x256xf32>
    %23 = vector.broadcast %22 : vector<1x256xf32> to vector<8x256xf32>
    %24 = arith.addf %20, %23 : vector<8x256xf32>
    %c0_22 = arith.constant 0 : index
    %c0_23 = arith.constant 0 : index
    %c0_24 = arith.constant 0 : index
    %25 = vector.load %arg10[%c0_22, %c0_23, %c0_24] : memref<1x8x256xf32, #tpu.memory_space<vmem>>, vector<1x8x256xf32>
    %26 = vector.shape_cast %25 : vector<1x8x256xf32> to vector<8x256xf32>
    %27 = vector.shape_cast %17 : vector<8x256xf32> to vector<1x8x256xf32>
    tpu.vector_store %arg10[%c0_22, %c0_23, %c0_24], %27 {strides = array<i32>} : memref<1x8x256xf32, #tpu.memory_space<vmem>>, vector<1x8x256xf32>,
    %c0_25 = arith.constant 0 : index
    %c0_26 = arith.constant 0 : index
    %c0_27 = arith.constant 0 : index
    %28 = vector.load %arg11[%c0_25, %c0_26, %c0_27] : memref<1x8x256xf32, #tpu.memory_space<vmem>>, vector<1x8x256xf32>
    %29 = vector.shape_cast %28 : vector<1x8x256xf32> to vector<8x256xf32>
    %30 = vector.shape_cast %24 : vector<8x256xf32> to vector<1x8x256xf32>
    tpu.vector_store %arg11[%c0_25, %c0_26, %c0_27], %30 {strides = array<i32>} : memref<1x8x256xf32, #tpu.memory_space<vmem>>, vector<1x8x256xf32>,
    return
  }
  func.func @transform_0(%arg0: i32, %arg1: i32, %arg2: memref<2xi32, #tpu.memory_space<smem>>) -> (i32, i32, i32) {
    %0 = arith.index_cast %arg0 : i32 to index
    %1 = memref.load %arg2[%0] : memref<2xi32, #tpu.memory_space<smem>>
    %c0_i32 = arith.constant 0 : i32
    %c0_i32_0 = arith.constant 0 : i32
    %c0_i32_1 = arith.constant 0 : i32
    return %1, %c0_i32, %c0_i32_0 : i32, i32, i32
  }
  func.func @transform_1(%arg0: i32, %arg1: i32, %arg2: memref<2xi32, #tpu.memory_space<smem>>) -> (i32, i32, i32) {
    %0 = arith.index_cast %arg0 : i32 to index
    %1 = memref.load %arg2[%0] : memref<2xi32, #tpu.memory_space<smem>>
    %c0_i32 = arith.constant 0 : i32
    %c0_i32_0 = arith.constant 0 : i32
    %c0_i32_1 = arith.constant 0 : i32
    return %1, %c0_i32, %c0_i32_0 : i32, i32, i32
  }
  func.func @transform_2(%arg0: i32, %arg1: i32, %arg2: memref<2xi32, #tpu.memory_space<smem>>) -> (i32, i32, i32) {
    %0 = arith.index_cast %arg0 : i32 to index
    %1 = memref.load %arg2[%0] : memref<2xi32, #tpu.memory_space<smem>>
    %c0_i32 = arith.constant 0 : i32
    %c0_i32_0 = arith.constant 0 : i32
    %c0_i32_1 = arith.constant 0 : i32
    return %1, %c0_i32, %c0_i32_0 : i32, i32, i32
  }
  func.func @transform_3(%arg0: i32, %arg1: i32, %arg2: memref<2xi32, #tpu.memory_space<smem>>) -> (i32, i32, i32) {
    %0 = arith.index_cast %arg0 : i32 to index
    %1 = memref.load %arg2[%0] : memref<2xi32, #tpu.memory_space<smem>>
    %c0_i32 = arith.constant 0 : i32
    %c0_i32_0 = arith.constant 0 : i32
    return %1, %c0_i32, %arg1 : i32, i32, i32
  }
  func.func @transform_4(%arg0: i32, %arg1: i32, %arg2: memref<2xi32, #tpu.memory_space<smem>>) -> (i32, i32, i32) {
    %0 = arith.index_cast %arg0 : i32 to index
    %1 = memref.load %arg2[%0] : memref<2xi32, #tpu.memory_space<smem>>
    %c0_i32 = arith.constant 0 : i32
    %c0_i32_0 = arith.constant 0 : i32
    return %1, %c0_i32, %arg1 : i32, i32, i32
  }
  func.func @transform_5(%arg0: i32, %arg1: i32, %arg2: memref<2xi32, #tpu.memory_space<smem>>) -> (i32, i32, i32) {
    %0 = arith.index_cast %arg0 : i32 to index
    %1 = memref.load %arg2[%0] : memref<2xi32, #tpu.memory_space<smem>>
    %c0_i32 = arith.constant 0 : i32
    %c0_i32_0 = arith.constant 0 : i32
    return %1, %c0_i32, %arg1 : i32, i32, i32
  }
  func.func @transform_6(%arg0: i32, %arg1: i32, %arg2: memref<2xi32, #tpu.memory_space<smem>>) -> (i32, i32, i32) {
    %0 = arith.index_cast %arg0 : i32 to index
    %1 = memref.load %arg2[%0] : memref<2xi32, #tpu.memory_space<smem>>
    %c0_i32 = arith.constant 0 : i32
    %c0_i32_0 = arith.constant 0 : i32
    return %1, %c0_i32, %arg1 : i32, i32, i32
  }
  func.func @transform_7(%arg0: i32, %arg1: i32, %arg2: memref<2xi32, #tpu.memory_space<smem>>) -> (i32, i32, i32) {
    %c0_i32 = arith.constant 0 : i32
    %c0_i32_0 = arith.constant 0 : i32
    return %arg0, %c0_i32, %arg1 : i32, i32, i32
  }
  func.func @transform_8(%arg0: i32, %arg1: i32, %arg2: memref<2xi32, #tpu.memory_space<smem>>) -> (i32, i32, i32) {
    %c0_i32 = arith.constant 0 : i32
    %c0_i32_0 = arith.constant 0 : i32
    return %arg0, %c0_i32, %arg1 : i32, i32, i32
  }
}

</mosaic_0001>

<bundles_post_ra>
// kernel: tpu_custom_call.1
= control target key start
LH: loop header
LB: loop body
LE: loop exit
PB: predicated region body
PF: predicated region fallthrough
CT: control target
= control target key end

     0   :  { %s2517_s0 = inlined_call_operand.hbm [shape: s32[2], index: 0, kind: input, shape index: {}]   ;;  %s2518_s1 = inlined_call_operand.hbm [shape: bf16[2,8,64], index: 1, kind: input, shape index: {}]   ;;  %s2519_s2 = inlined_call_operand.hbm [shape: bf16[2,64,64], index: 2, kind: input, shape index: {}]   ;;  %s2520_s3 = inlined_call_operand.vmem [shape: f32[2,1,64], index: 3, kind: input, shape index: {}]   ;;  %s2521_s4 = inlined_call_operand.hbm [shape: bf16[2,64,256], index: 4, kind: input, shape index: {}]   ;;  %s2522_s5 = inlined_call_operand.hbm [shape: bf16[2,64,256], index: 5, kind: input, shape index: {}]   ;;  %s2523_s6 = inlined_call_operand.vmem [shape: f32[2,1,256], index: 6, kind: input, shape index: {}]   ;;  %s2524_s7 = inlined_call_operand.vmem [shape: f32[2,1,256], index: 7, kind: input, shape index: {}]   ;;  %s2525_s8 = inlined_call_operand.hbm [shape: f32[2,8,256], index: 8, kind: output, shape index: {0}]   ;;  %s2526_s9 = inlined_call_operand.hbm [shape: f32[2,8,256], index: 9, kind: output, shape index: {1}]  }
   0x1   :  { %2551 = sst [smem:[#allocation43_spill]] %s2518_s1  ;;  %s1470_s11 = scalar_lea.hbm %s2517_s0, 16 }
   0x2   :  { %2552 = sst [smem:[#allocation44_spill]] %s2519_s2  ;;  %p1471_p0 = scmp.ne.s32.totalorder %s2517_s0, %s1470_s11 }
   0x3   :  { %2553 = sst [smem:[#allocation45_spill]] %s2520_s3  ;;  %p1474_p1 = scmp.lt.u32.totalorder %s1470_s11, %s2517_s0 }
   0x4   :  { %2554 = sst [smem:[#allocation46_spill]] %s2521_s4 }
   0x5   :  { %2555 = sst [smem:[#allocation47_spill]] %s2522_s5  ;;  %p1476_p2 = pnand %p1474_p1, %p1471_p0 }
   0x6   :  { %2556 = sst [smem:[#allocation48_spill]] %s2523_s6 }
   0x7   :  { %2557 = sst [smem:[#allocation49_spill]] %s2524_s7 }
   0x8   :  { %2558 = sst [smem:[#allocation50_spill]] %s2525_s8 }
   0x9   :  { %2559 = sst [smem:[#allocation51_spill]] %s2526_s9 }
   0xa   :  { %1479 = shalt.err (!%p1476_p2)  }
   0xb   :  { %s1826_s16 = smov [#allocation3]  }
   0xc   :  { %16 = dma.hbm_to_smem %s2517_s0, 16, %s1826_s16, [#allocation2] }
   0xd   :  { %1728 = dma.done.wait [#allocation2], 16 }
   0xe   :  { %1729 = vsyncadd [#allocation2], 4294967280 }
   0xf   :  { %18 = sfence }
  0x10   :  { %19 = vsyncpa [#allocation5], 0 }
  0x11   :  { %21 = vsyncpa [#allocation5 + $0x1], 0 }
  0x12   :  { %22 = vsyncpa [#allocation8], 0 }
  0x13   :  { %24 = vsyncpa [#allocation8 + $0x1], 0 }
  0x14   :  { %25 = vsyncpa [#allocation11], 0 }
  0x15   :  { %27 = vsyncpa [#allocation11 + $0x1], 0 }
  0x16   :  { %28 = vsyncpa [#allocation6], 0 }
  0x17   :  { %30 = vsyncpa [#allocation6 + $0x1], 0 }
  0x18   :  { %31 = vsyncpa [#allocation14], 0 }
  0x19   :  { %33 = vsyncpa [#allocation14 + $0x1], 0  ;;  %s1902_s19 = smov 0   ;;  %s1904_s20 = smov 0  }
  0x1a   :  { %s1906_s21 = smov 0   ;;  %s1908_s0 = smov 0  }
  0x1b   :  { %s1910_s22 = smov 0   ;;  %s1912_s23 = smov 0  }
  0x1c   :  { %s1914_s24 = smov 0   ;;  %s1916_s25 = smov 0  }
  0x1d   :  { %s1918_s26 = smov 0   ;;  %s1920_s27 = smov 0  }
  0x1e   :  { %s1922_s28 = smov 0   ;;  %s1924_s29 = smov 0  }
  0x1f   :  { %s1926_s30 = smov 0   ;;  %s1928_s10 = smov 0  }
  0x20   :  { %s1930_s11 = smov 0   ;;  %s1932_s12 = smov 0  }
  0x21   :  { %s1934_s13 = smov 0   ;;  %s1936_s14 = smov 0  }
  0x22 LB: > { %2560 = sst [smem:[#allocation30_spill]] %s1756_s19  ;;  %s1991_s15 = sadd.s32 4294967295, %s1824_s14   ;;  %s1824_s14 = sphi %s1936_s14, %s39_s14   ;;  %s1820_s13 = sphi %s1934_s13, %s2651_s13   ;;  %s1816_s12 = sphi %s1932_s12, %s2650_s12   ;;  %s1812_s11 = sphi %s1930_s11, %s2649_s11   ;;  %s1808_s10 = sphi %s1928_s10, %s2648_s10   ;;  %s1804_s30 = sphi %s1926_s30, %s2647_s30   ;;  %s1800_s29 = sphi %s1924_s29, %s2646_s29   ;;  %s1796_s28 = sphi %s1922_s28, %s2645_s28   ;;  %s1792_s27 = sphi %s1920_s27, %s2630_s27   ;;  %s1788_s26 = sphi %s1918_s26, %s2644_s26   ;;  %s1784_s25 = sphi %s1916_s25, %s2643_s25   ;;  %s1780_s24 = sphi %s1914_s24, %s2642_s24   ;;  %s1776_s23 = sphi %s1912_s23, %s2641_s23   ;;  %s1772_s22 = sphi %s1910_s22, %s2640_s22   ;;  %s1768_s0 = sphi %s1908_s0, %s2639_s0   ;;  %s1764_s21 = sphi %s1906_s21, %s2629_s21   ;;  %s1760_s20 = sphi %s1904_s20, %s2637_s20   ;;  %s1756_s19 = sphi %s1902_s19, %s2635_s19  }
  0x23   : > { %2561 = sst [smem:[#allocation31_spill]] %s1764_s21  ;;  %s1161_s16 = sadd.s32 4294967294, %s1824_s14  }
  0x24   : > { %2562 = sst [smem:[#allocation32_spill]] %s1796_s28  ;;  %s51_s17 = sadd.s32 1, %s1820_s13 }
  0x25   : > { %2563 = sst [smem:[#allocation33_spill]] %s1800_s29  ;;  %p2539_p3 = scmp.eq.s32.totalorder %s1824_s14, 0 }
  0x26   : > { %2564 = sst [smem:[#allocation34_spill]] %s1812_s11  ;;  %p53_p4 = scmp.ge.s32.totalorder %s51_s17, 2 }
  0x27   : > { %2565 = sst [smem:[#allocation35_spill]] %s1816_s12  ;;  %p2540_p5 = scmp.eq.s32.totalorder %s1991_s15, 0 }
  0x28   : > { %s83_s18 = sld [smem:[#allocation3 + %s1820_s13]]  ;;  %s88_s9 = sadd.s32 1, %s1800_s29 }
  0x29   : > { %s2653_s17 = smov (%p53_p4, %s51_s17), 0  ;;  %p95_p6 = scmp.ne.s32.totalorder %s1800_s29, %s1796_s28 }
  0x2a   : > { %2566 = sst [smem:[#allocation36_spill]] %s2653_s17  ;;  %p101_p7 = scmp.ne.s32.totalorder %s1796_s28, %s1792_s27 }
  0x2b   : > { %s84_s8 = sld [smem:[#allocation3 + %s2653_s17]]  ;;  %s259_s7 = ssub.s32 %s1820_s13, %s2653_s17 }
  0x2c   : > { %p2009_p8 = por %p95_p6, %p2539_p3  ;;  %p2015_p9 = por %p101_p7, %p2540_p5 }
  0x2d   : > { %p262_p10 = scmp.eq.s32.totalorder %s259_s7, 0  ;;  %s264_s12 = sadd.s32 1, %s1764_s21 }
  0x2e   : > { %s2568_s3 = scalar_select %p2015_p9, 1, 0 }
  0x2f   : > { %p274_p11 = scmp.ne.s32.totalorder %s1764_s21, %s1760_s20  ;;  %p275_p12 = scmp.eq.s32.totalorder %s1991_s15, 1 }
  0x30   : > { %2569 = sst [smem:[#allocation37_spill]] %s2568_s3  ;;  %p280_p0 = scmp.ne.s32.totalorder %s1760_s20, %s1756_s19 }
  0x31   : > { %s2024_s27 = scalar_select %p262_p10, %s1764_s21, %s264_s12  }
  0x32   : > { %p2026_p13 = por %p275_p12, %p274_p11  ;;  %s85_s3 = ssub.s32 %s83_s18, %s84_s8 }
  0x33   : > { %2570 = sst [smem:[#allocation38_spill]] %s2024_s27  ;;  %p281_p1 = scmp.eq.s32.totalorder %s1161_s16, 1 }
  0x34   : > { %s2571_s28 = scalar_select %p2026_p13, 1, 0 }
  0x35   : > { %p86_p2 = scmp.eq.s32.totalorder %s85_s3, 0  ;;  %p2033_p6 = por %p281_p1, %p280_p0 }
  0x36   : > { %2572 = sst [smem:[#allocation39_spill]] %s2571_s28  ;;  %p2538_p7 = scmp.lt.s32.totalorder %s1824_s14, 2 }
  0x37   : > { %s2573_s7 = scalar_select %p2033_p6, 1, 0 }
  0x38   : > { %s2039_s12 = scalar_select %p86_p2, %s1800_s29, %s88_s9  }
  0x39   : > { %2574 = sst [smem:[#allocation40_spill]] %s2573_s7  ;;  %s348_s27 = sand.u32 1, %s1824_s14  }
  0x3a   : > { %2575 = sst [smem:[#allocation41_spill]] %s2039_s12  ;;  %s350_s21 = sand.u32 1, %s1800_s29  }
  0x3b   : > { %s1166_s5 = sshll.u32 %s350_s21, 5  ;;  %p2047_p10 = pnand %p2538_p7, %p2009_p8 }
  0x3c   : > { %s1241_s3 = scalar_select %p2009_p8, [#allocation3], [#allocation16] }
  0x3d   : > { %s1242_s8 = scalar_select %p2009_p8, %s1820_s13, 0 }
  0x3e   : > { %s2655_s3 = smov (!%p2538_p7, %s1241_s3), [#allocation20]  ;;  %s352_s9 = scalar_lea.vmem [#allocation7], %s1166_s5 }
  0x3f   : > { %s2657_s8 = smov (!%p2538_p7, %s1242_s8), 0  ;;  %s360_s16 = sshll.u32 %s352_s9, 4  ;;  %s2060_s16 = int_to_ptr.vmem [resolvable:$true] %s360_s16 }
  0x40   : > { %s353_s18 = sld [smem:[%s2655_s3 + %s2657_s8]]  ;;  %p1175_p11 = scmp.ge.s32.totalorder %s1824_s14, 1 }
  0x41   : > { %p452_p12 = scmp.lt.s32.totalorder %s1824_s14, 3  ;;  %s2578_s2 = sld [smem:[#allocation44_spill]] }
  0x42   : > { %s2073_s5 = scalar_lea.sflag [#allocation8], %s348_s27  ;;  %p1482_p1 = pneg %p2047_p10 }
  0x43   : > { %p2064_p0 = pnand %p1175_p11, %p452_p12 }
  0x45   : > { %s2577_s21 = scalar_select %p2064_p0, 1, 0 }
  0x46   : > { %s1216_s12 = sshll.u32 %s353_s18, 9 }
  0x47   : > { %s2071_s7 = scalar_lea.hbm %s2578_s2, %s1216_s12  ;;  %s1485_s29 = scalar_lea.hbm %s2578_s2, 1024 }
  0x48   : > { %s1480_s3 = scalar_lea.hbm %s2071_s7, 512  ;;  %p1486_p12 = scmp.lt.u32.totalorder %s2071_s7, %s2578_s2 }
  0x49   : > { %p1481_p8 = scmp.ne.s32.totalorder %s2071_s7, %s1480_s3  ;;  %p1487_p4 = scmp.lt.u32.totalorder %s1485_s29, %s1480_s3 }
  0x4a   : > { %p1489_p3 = scmp.lt.u32.totalorder %s1480_s3, %s2071_s7 }
  0x4b   : > { %p1483_p2 = pnand %p1482_p1, %p1481_p8  ;;  %p1488_p7 = por %p1487_p4, %p1486_p12 }
  0x4d   : > { %p1484_p11 = pneg %p1483_p2  ;;  %p1490_p5 = por %p1489_p3, %p1488_p7 }
  0x4f   : > { %p1491_p6 = pnand %p1490_p5, %p1484_p11 }
  0x51   : > { %1494 = shalt.err (!%p1491_p6)
}
  0x52   : > { %s1495_s27 = scalar_lea.vmem %s2060_s16, 512  ;;  %s1827_s6 = smov [#allocation7]  }
  0x53   : > { %p1496_p8 = scmp.ne.s32.totalorder %s2060_s16, %s1495_s27  ;;  %s1500_s8 = sshll.u32 %s1827_s6, 4  ;;  %s1501_s8 = int_to_ptr.vmem [resolvable:$false] %s1500_s8 }
  0x54   : > { %s1502_s9 = scalar_lea.vmem %s1501_s8, 1024  ;;  %p1503_p9 = scmp.lt.s32.totalorder %s2060_s16, %s1501_s8 }
  0x55   : > { %p1498_p2 = pnand %p1496_p8, %p1482_p1  ;;  %p1504_p4 = scmp.lt.s32.totalorder %s1502_s9, %s1495_s27 }
  0x57   : > { %p1499_p13 = pneg %p1498_p2  ;;  %p1505_p12 = por %p1504_p4, %p1503_p9 }
  0x59   : > { %p1506_p3 = pnand %p1505_p12, %p1499_p13 }
  0x5b   : > { %1509 = shalt.err (!%p1506_p3)
}
  0x5c   : > { %s1828_s3 = smov 64   ;;  %s1829_s29 = smov 4  }
  0x5d   : > { %1268 = dma.hbm_to_vmem [thread:$0]  (!%p2047_p10), %s2071_s7, 512, %s2060_s16, %s2073_s5, %s1828_s3, %s1828_s3, %s1829_s29  }
  0x5e   : > { %s55_s12 = sld [smem:[#allocation3 + %s1820_s13]]  ;;  %p67_p5 = scmp.ne.s32.totalorder %s1812_s11, %s1808_s10 }
  0x5f   : > { %s56_s18 = sld [smem:[#allocation3 + %s2653_s17]]  ;;  %p73_p9 = scmp.ne.s32.totalorder %s1808_s10, %s1804_s30 }
  0x60   : > { %s60_s27 = sadd.s32 1, %s1812_s11  ;;  %s329_s6 = sand.u32 1, %s1812_s11  }
  0x61   : > { %p2579_p13 = scmp.eq.s32.totalorder %s1991_s15, 0  ;;  %p2581_p7 = scmp.eq.s32.totalorder %s1824_s14, 0 }
  0x62   : > { %s1164_s19 = sshll.u32 %s329_s6, 2  ;;  %p2582_p10 = scmp.lt.s32.totalorder %s1824_s14, 2 }
  0x63   : > { %p2111_p6 = por %p2579_p13, %p73_p9  ;;  %p69_p1 = por %p2581_p7, %p67_p5 }
  0x64   : > { %s333_s16 = scalar_lea.vmem [#allocation4], %s1164_s19  ;;  %p2585_p2 = pmov %p2582_p10 }
  0x65   : > { %s2580_s8 = scalar_select %p2111_p6, 1, 0 }
  0x66   : > { %s57_s7 = ssub.s32 %s55_s12, %s56_s18  ;;  %p2119_p11 = pnand %p2582_p10, %p69_p1 }
  0x67   : > { %p58_p8 = scmp.eq.s32.totalorder %s57_s7, 0  ;;  %s341_s9 = sshll.u32 %s333_s16, 4  ;;  %s2134_s9 = int_to_ptr.vmem [resolvable:$true] %s341_s9 }
  0x68   : > { %s1238_s3 = scalar_select %p69_p1, [#allocation3], [#allocation15] }
  0x69   : > { %s2124_s29 = scalar_select %p58_p8, %s1812_s11, %s60_s27  }
  0x6a   : > { %s1239_s2 = scalar_select %p69_p1, %s1820_s13, 0 }
  0x6b   : > { %2584 = sst [smem:[#allocation42_spill]] %s2124_s29  ;;  %s2659_s3 = smov (!%p2585_p2, %s1238_s3), [#allocation19] }
  0x6c   : > { %p2586_p4 = pmov %p2585_p2  ;;  %s2132_s18 = sld [smem:[#allocation3 + %s1820_s13]] }
  0x6d   : > { %s2137_s7 = sld [smem:[#allocation3 + %s2653_s17]]  ;;  %p153_p12 = scmp.ne.s32.totalorder %s1788_s26, %s1784_s25 }
  0x6e   : > { %s2661_s2 = smov (!%p2586_p4, %s1239_s2), 0  ;;  %p159_p3 = scmp.ne.s32.totalorder %s1784_s25, %s1780_s24 }
  0x6f   : > { %s334_s12 = sld [smem:[%s2659_s3 + %s2661_s2]]  ;;  %p2587_p5 = pmov %p2581_p7 }
  0x70   : > { %s2589_s1 = sld [smem:[#allocation43_spill]]  ;;  %p2158_p7 = por %p159_p3, %p2579_p13 }
  0x71   : > { %p2147_p9 = por %p153_p12, %p2587_p5  ;;  %s330_s3 = scalar_lea.sflag [#allocation5], %s329_s6 }
  0x72   : > { %s2590_s24 = scalar_select %p2158_p7, 1, 0 }
  0x73   : > { %p1512_p10 = pneg %p2119_p11 }
  0x75   : > { %s1165_s27 = sshll.u32 %s334_s12, 6 }
  0x76   : > { %s2154_s2 = scalar_lea.hbm %s2589_s1, %s1165_s27  ;;  %s1515_s27 = scalar_lea.hbm %s2589_s1, 128 }
  0x77   : > { %s1510_s12 = scalar_lea.hbm %s2154_s2, 64  ;;  %p1516_p4 = scmp.lt.u32.totalorder %s2154_s2, %s2589_s1 }
  0x78   : > { %p1511_p1 = scmp.ne.s32.totalorder %s2154_s2, %s1510_s12  ;;  %p1517_p12 = scmp.lt.u32.totalorder %s1515_s27, %s1510_s12 }
  0x79   : > { %p1519_p5 = scmp.lt.u32.totalorder %s1510_s12, %s2154_s2 }
  0x7a   : > { %p1513_p8 = pnand %p1512_p10, %p1511_p1  ;;  %p1518_p3 = por %p1517_p12, %p1516_p4 }
  0x7c   : > { %p1514_p2 = pneg %p1513_p8  ;;  %p1520_p13 = por %p1519_p5, %p1518_p3 }
  0x7e   : > { %p1521_p7 = pnand %p1520_p13, %p1514_p2 }
  0x80   : > { %1524 = shalt.err (!%p1521_p7)
}
  0x81   : > { %s1525_s6 = scalar_lea.vmem %s2134_s9, 64  ;;  %s1830_s28 = smov [#allocation4]  }
  0x82   : > { %p1526_p1 = scmp.ne.s32.totalorder %s2134_s9, %s1525_s6  ;;  %s1530_s11 = sshll.u32 %s1830_s28, 4  ;;  %s1531_s11 = int_to_ptr.vmem [resolvable:$false] %s1530_s11 }
  0x83   : > { %s1532_s19 = scalar_lea.vmem %s1531_s11, 128  ;;  %p1533_p0 = scmp.lt.s32.totalorder %s2134_s9, %s1531_s11 }
  0x84   : > { %p1528_p8 = pnand %p1526_p1, %p1512_p10  ;;  %p1534_p4 = scmp.lt.s32.totalorder %s1532_s19, %s1525_s6 }
  0x86   : > { %p1529_p6 = pneg %p1528_p8  ;;  %p1535_p12 = por %p1534_p4, %p1533_p0 }
  0x88   : > { %p1536_p3 = pnand %p1535_p12, %p1529_p6 }
  0x8a   : > { %1539 = shalt.err (!%p1536_p3)
}
  0x8b   : > { %1263 = dma.hbm_to_vmem [thread:$0]  (!%p2119_p11), %s2154_s2, 64, %s2134_s9, %s330_s3  }
  0x8c   : > { %s141_s16 = ssub.s32 %s2132_s18, %s2137_s7  ;;  %s2591_s12 = sand.u32 1, %s1788_s26  }
  0x8d   : > { %s1169_s30 = sshll.u32 %s2591_s12, 6  ;;  %p144_p0 = scmp.eq.s32.totalorder %s141_s16, 0 }
  0x8e   : > { %s1244_s27 = scalar_select %p2147_p9, [#allocation3], [#allocation17] }
  0x8f   : > { %s2592_s6 = sadd.s32 1, %s1788_s26  ;;  %p2593_p6 = scmp.lt.s32.totalorder %s1824_s14, 2 }
  0x90   : > { %s2196_s28 = scalar_select %p144_p0, %s1788_s26, %s2592_s6  }
  0x91   : > { %s1245_s11 = scalar_select %p2147_p9, %s1820_s13, 0 }
  0x92   : > { %s2663_s27 = smov (!%p2593_p6, %s1244_s27), [#allocation21]  ;;  %p2594_p7 = pmov %p2593_p6 }
  0x93   : > { %s382_s19 = scalar_lea.vmem [#allocation9], %s1169_s30  ;;  %p2595_p11 = pmov %p2593_p6 }
  0x94   : > { %s2665_s11 = smov (!%p2594_p7, %s1245_s11), 0  ;;  %s392_s1 = sshll.u32 %s382_s19, 4  ;;  %s2213_s1 = int_to_ptr.vmem [resolvable:$true] %s392_s1 }
  0x95   : > { %p2209_p10 = pnand %p2595_p11, %p2147_p9  ;;  %s383_s18 = sld [smem:[%s2663_s27 + %s2665_s11]] }
  0x96   : > { %s2216_s7 = sld [smem:[#allocation3 + %s1820_s13]]  ;;  %p183_p9 = scmp.ne.s32.totalorder %s1776_s23, %s1772_s22 }
  0x97   : > { %s2219_s2 = sld [smem:[#allocation3 + %s2653_s17]]  ;;  %p1542_p5 = pneg %p2209_p10 }
  0x98   : > { %s2597_s4 = sld [smem:[#allocation46_spill]] }
  0x9b   : > { %s1217_s3 = sshll.u32 %s383_s18, 10 }
  0x9e   : > { %s2224_s30 = scalar_lea.hbm %s2597_s4, %s1217_s3  ;;  %s1545_s11 = scalar_lea.hbm %s2597_s4, 2048 }
  0x9f   : > { %s1540_s29 = scalar_lea.hbm %s2224_s30, 1024  ;;  %p1546_p8 = scmp.lt.u32.totalorder %s2224_s30, %s2597_s4 }
  0xa0   : > { %p1541_p2 = scmp.ne.s32.totalorder %s2224_s30, %s1540_s29  ;;  %p1547_p4 = scmp.lt.u32.totalorder %s1545_s11, %s1540_s29 }
  0xa1   : > { %p1549_p3 = scmp.lt.u32.totalorder %s1540_s29, %s2224_s30 }
  0xa2   : > { %p1543_p13 = pnand %p1542_p5, %p1541_p2  ;;  %p1548_p12 = por %p1547_p4, %p1546_p8 }
  0xa4   : > { %p1544_p1 = pneg %p1543_p13  ;;  %p1550_p0 = por %p1549_p3, %p1548_p12 }
  0xa6   : > { %p1551_p6 = pnand %p1550_p0, %p1544_p1 }
  0xa8   : > { %1554 = shalt.err (!%p1551_p6)
}
  0xa9   : > { %s1555_s3 = scalar_lea.vmem %s2213_s1, 1024  ;;  %s1831_s16 = smov [#allocation9]  }
  0xaa   : > { %p1556_p7 = scmp.ne.s32.totalorder %s2213_s1, %s1555_s3  ;;  %s1560_s12 = sshll.u32 %s1831_s16, 4  ;;  %s1561_s12 = int_to_ptr.vmem [resolvable:$false] %s1560_s12 }
  0xab   : > { %s1562_s27 = scalar_lea.vmem %s1561_s12, 2048  ;;  %p1563_p13 = scmp.lt.s32.totalorder %s2213_s1, %s1561_s12 }
  0xac   : > { %p1558_p11 = pnand %p1556_p7, %p1542_p5  ;;  %p1564_p8 = scmp.lt.s32.totalorder %s1562_s27, %s1555_s3 }
  0xae   : > { %p1559_p2 = pneg %p1558_p11  ;;  %p1565_p4 = por %p1564_p8, %p1563_p13 }
  0xb0   : > { %p1566_p12 = pnand %p1565_p4, %p1559_p2 }
  0xb2   : > { %1569 = shalt.err (!%p1566_p12)
}
  0xb3   : > { %s2548_s29 = smov 128   ;;  %s2549_s6 = smov 8  }
  0xb4   : > { %1273 = dma.hbm_to_vmem [thread:$0]  (!%p2209_p10), %s2224_s30, 1024, %s2213_s1, %s2073_s5, %s2548_s29, %s2548_s29, %s2549_s6  }
  0xb5   : > { %p189_p5 = scmp.ne.s32.totalorder %s1772_s22, %s1768_s0  ;;  %s176_s11 = sadd.s32 1, %s1776_s23 }
  0xb6   : > { %p2598_p1 = scmp.eq.s32.totalorder %s1824_s14, 0  ;;  %s171_s19 = ssub.s32 %s2216_s7, %s2219_s2 }
  0xb7   : > { %p2599_p0 = scmp.eq.s32.totalorder %s1991_s15, 0  ;;  %p174_p7 = scmp.eq.s32.totalorder %s171_s19, 0 }
  0xb8   : > { %p185_p3 = por %p183_p9, %p2598_p1  ;;  %s402_s3 = sand.u32 1, %s1776_s23  }
  0xb9   : > { %p2269_p6 = por %p189_p5, %p2599_p0  ;;  %p2601_p11 = scmp.lt.s32.totalorder %s1824_s14, 2 }
  0xba   : > { %s2281_s1 = scalar_select %p174_p7, %s1776_s23, %s176_s11  }
  0xbb   : > { %p2276_p2 = pnand %p2601_p11, %p185_p3  ;;  %s1172_s0 = sshll.u32 %s402_s3, 6 }
  0xbc   : > { %s1247_s5 = scalar_select %p185_p3, [#allocation3], [#allocation18] }
  0xbd   : > { %s1248_s30 = scalar_select %p185_p3, %s1820_s13, 0 }
  0xbe   : > { %p2603_p10 = pmov %p2601_p11  ;;  %s406_s2 = scalar_lea.vmem [#allocation10], %s1172_s0 }
  0xbf   : > { %s416_s16 = sshll.u32 %s406_s2, 4  ;;  %s2605_s29 = sld [smem:[#allocation47_spill]]  ;;  %s2288_s16 = int_to_ptr.vmem [resolvable:$true] %s416_s16 }
  0xc0   : > { %s2667_s5 = smov (!%p2603_p10, %s1247_s5), [#allocation22]  ;;  %p2604_p9 = pmov %p2603_p10 }
  0xc1   : > { %s2295_s11 = scalar_lea.sflag [#allocation11], %s402_s3  ;;  %p1572_p8 = pneg %p2276_p2 }
  0xc2   : > { %s2669_s30 = smov (!%p2604_p9, %s1248_s30), 0 }
  0xc3   : > { %s407_s7 = sld [smem:[%s2667_s5 + %s2669_s30]] }
  0xc5   : > { %s2606_s6 = smov %s2605_s29 }
  0xc6   : > { %s1575_s30 = scalar_lea.hbm %s2606_s6, 2048 }
  0xc9   : > { %s1218_s12 = sshll.u32 %s407_s7, 10 }
  0xca   : > { %s2293_s4 = scalar_lea.hbm %s2605_s29, %s1218_s12 }
  0xcb   : > { %s1570_s17 = scalar_lea.hbm %s2293_s4, 1024  ;;  %p1576_p5 = scmp.lt.u32.totalorder %s2293_s4, %s2606_s6 }
  0xcc   : > { %p1571_p13 = scmp.ne.s32.totalorder %s2293_s4, %s1570_s17  ;;  %p1577_p1 = scmp.lt.u32.totalorder %s1575_s30, %s1570_s17 }
  0xcd   : > { %p1579_p0 = scmp.lt.u32.totalorder %s1570_s17, %s2293_s4 }
  0xce   : > { %p1573_p4 = pnand %p1572_p8, %p1571_p13  ;;  %p1578_p3 = por %p1577_p1, %p1576_p5 }
  0xd0   : > { %p1574_p12 = pneg %p1573_p4  ;;  %p1580_p7 = por %p1579_p0, %p1578_p3 }
  0xd2   : > { %p1581_p11 = pnand %p1580_p7, %p1574_p12 }
  0xd4   : > { %1584 = shalt.err (!%p1581_p11)
}
  0xd5   : > { %s1585_s3 = scalar_lea.vmem %s2288_s16, 1024  ;;  %s1834_s2 = smov [#allocation10]  }
  0xd6   : > { %p1586_p10 = scmp.ne.s32.totalorder %s2288_s16, %s1585_s3  ;;  %s1590_s12 = sshll.u32 %s1834_s2, 4  ;;  %s1591_s12 = int_to_ptr.vmem [resolvable:$false] %s1590_s12 }
  0xd7   : > { %s1592_s27 = scalar_lea.vmem %s1591_s12, 2048  ;;  %p1593_p4 = scmp.lt.s32.totalorder %s2288_s16, %s1591_s12 }
  0xd8   : > { %p1588_p9 = pnand %p1586_p10, %p1572_p8  ;;  %p1594_p5 = scmp.lt.s32.totalorder %s1592_s27, %s1585_s3 }
  0xda   : > { %p1589_p13 = pneg %p1588_p9  ;;  %p1595_p1 = por %p1594_p5, %p1593_p4 }
  0xdc   : > { %p1596_p3 = pnand %p1595_p1, %p1589_p13 }
  0xde   : > { %1599 = shalt.err (!%p1596_p3)
}
  0xdf   : > { %s2607_s17 = smov 8   ;;  %s2608_s19 = smov 128  }
  0xe0   : > { %1278 = dma.hbm_to_vmem [thread:$0]  (!%p2276_p2), %s2293_s4, 1024, %s2288_s16, %s2295_s11, %s2608_s19, %s2608_s19, %s2607_s17  }
  0xe1   : > { %p2609_p8 = scmp.ne.s32.totalorder %s2577_s21, 0 }
  0xe2   : > { %s458_s0 = sand.u32 (!%p2609_p8), 1, %s1808_s10   ;;  %p2610_p12 = scmp.ne.s32.totalorder (!%p2609_p8), %s2580_s8, 0 }
  0xe3   : > { %456 = sbr.rel (%p2609_p8) target bundleno = 749 (0x2ed), region = 48  ;;  %s2329_s5 = sshll.u32 (!%p2609_p8), %s458_s0, 2 }
  0xe4   : > { %s459_s30 = scalar_lea.sflag (!%p2609_p8), [#allocation5], %s458_s0  ;;  %s462_s29 = scalar_lea.vmem (!%p2609_p8), [#allocation4], %s2329_s5 }
  0xea   : > { %1731 = dma.done.wait (%p2610_p12), %s459_s30, 64  }
  0xeb   : > { %1733 = vsyncadd (%p2610_p12), %s459_s30, 4294967232  ;;  %s2611_s9 = sld [smem:[#allocation32_spill]]  ;;  %s2612_s7 = sld [smem:[#allocation37_spill]] }
  0xec   : > { %s467_s4 = sand.u32 1, %s1991_s15  }
  0xed   : > { %s468_s11 = scalar_lea.sflag [#allocation8], %s467_s4 }
  0xf1   : > { %s469_s16 = sand.u32 1, %s2611_s9   ;;  %p2613_p2 = scmp.ne.s32.totalorder %s2612_s7, 0 }
  0xf2   : > { %s1177_s21 = sshll.u32 %s469_s16, 5 }
  0xf3   : > { %s471_s3 = scalar_lea.vmem [#allocation7], %s1177_s21 }
  0xf4   : > { %1735 = dma.done.wait (%p2613_p2), %s468_s11, 512  }
  0xf5   : > { %1737 = vsyncadd (%p2613_p2), %s468_s11, 4294966784  ;;  %s478_s2 = sand.u32 1, %s1784_s25   ;;  %p2614_p0 = scmp.ne.s32.totalorder %s2590_s24, 0 }
  0xf6   : > { %s1178_s12 = sshll.u32 %s478_s2, 6 }
  0xf7   : > { %s2343_s27 = scalar_lea.vmem [#allocation9], %s1178_s12 }
  0xf8   : > { %1739 = dma.done.wait (%p2614_p0), %s468_s11, 1024  }
  0xf9   : > { %1741 = vsyncadd (%p2614_p0), %s468_s11, 4294966272  ;;  %s485_s15 = sand.u32 1, %s1772_s22  }
  0xfa   : > { %s1179_s8 = sshll.u32 %s485_s15, 6  ;;  %s486_s17 = scalar_lea.sflag [#allocation11], %s485_s15 }
  0xfb   : > { %s2350_s19 = scalar_lea.vmem [#allocation10], %s1179_s8 }
  0xfc   : > { %1743 = dma.done.wait (%p2269_p6), %s486_s17, 1024  }
  0xfd   : > { %1745 = vsyncadd (%p2269_p6), %s486_s17, 4294966272  ;;  %v1835_v0 = vmov 0.0   ;;  %vm1836_vm0 = vmmov 0   ;;  %v1440_v1 = vld [vmem:[%s471_s3] sm:$0xff]   ;;  %v1441_v2 = vld [vmem:[%s471_s3 + $0x8] sm:$0xff]   ;;  %vm640_vm1 = vcmask 523264   ;;  %v696_v31 = vlaneseq }
  0xfe   : > { %1226 = vmatprep.subr.bf16.mxu0 %v1835_v0  ;;  %1234 = vmatprep.mubr.msk.bf16.mxu0 %vm1836_vm0, %v1835_v0  ;;  %v1442_v3 = vld [vmem:[%s471_s3 + $0x10] sm:$0xff]   ;;  %v1443_v4 = vld [vmem:[%s471_s3 + $0x18] sm:$0xff]   ;;  %v1444_v6 = vld [vmem:[%s2343_s27 + $0x4] ss:$8 sps:$4 sm:$0xff]   ;;  %s2615_s24 = sld [smem:[#allocation35_spill]]  ;;  %v1837_v22 = vmov 0  }
  0xff   : > { %1227 = vmatpush3.bf16.msra.mxu0 %v1440_v1  ;;  %v600_v5 = vld [vmem:[%s462_s29] sm:$0xf]  ;;  %v1448_v7 = vld [vmem:[%s2350_s19 + $0x4] ss:$8 sps:$4 sm:$0xff]   ;;  %v1446_v8 = vld [vmem:[%s2350_s19] ss:$8 sps:$4 sm:$0xff]   ;;  %749 = vmatprep.subr.bf16.mxu1 %v1444_v6 }
 0x100   : > { %1228 = vmatprep.subr.bf16.mxu0 %v1835_v0  ;;  %v1449_v9 = vld [vmem:[%s2343_s27] ss:$8 sps:$4 sm:$0xff]   ;;  %v1450_v10 = vld [vmem:[%s2343_s27 + $0x14] ss:$8 sps:$4 sm:$0xff]   ;;  %v1452_v12 = vld [vmem:[%s2350_s19 + $0x10] ss:$8 sps:$4 sm:$0xff]   ;;  %781 = vmatprep.mubr.bf16.mxu1 %v1837_v22 }
 0x101   : > { %750 = vmatpush1.bf16.msra.mxu1 %v1449_v9  ;;  %v1454_v11 = vld [vmem:[%s2350_s19 + $0x14] ss:$8 sps:$4 sm:$0xff]   ;;  %v1455_v13 = vld [vmem:[%s2343_s27 + $0x10] ss:$8 sps:$4 sm:$0xff]   ;;  %v1456_v14 = vld [vmem:[%s2343_s27 + $0x24] ss:$8 sps:$4 sm:$0xff]  }
 0x102   : > { %751 = vmatprep.subr.bf16.mxu1 %v1450_v10  ;;  %v1460_v15 = vld [vmem:[%s2350_s19 + $0x24] ss:$8 sps:$4 sm:$0xff]   ;;  %v1458_v16 = vld [vmem:[%s2350_s19 + $0x20] ss:$8 sps:$4 sm:$0xff]   ;;  %v1462_v18 = vld [vmem:[%s2343_s27 + $0x34] ss:$8 sps:$4 sm:$0xff]  }
 0x103   : > { %1229 = vmatpush3.bf16.msra.mxu0 %v1441_v2  ;;  %v1461_v17 = vld [vmem:[%s2343_s27 + $0x20] ss:$8 sps:$4 sm:$0xff]   ;;  %v1466_v19 = vld [vmem:[%s2350_s19 + $0x34] ss:$8 sps:$4 sm:$0xff]   ;;  %v1464_v20 = vld [vmem:[%s2350_s19 + $0x30] ss:$8 sps:$4 sm:$0xff]  }
 0x104   : > { %1230 = vmatprep.subr.bf16.mxu0 %v1835_v0  ;;  %v1467_v21 = vld [vmem:[%s2343_s27 + $0x30] ss:$8 sps:$4 sm:$0xff]   ;;  %s566_s18 = sld [smem:[#allocation3 + %s2615_s24]]  ;;  %v697_v32 = vshrl.u32 %v696_v31, 7  ;;  %s2384_s21 = sand.u32 1, %s1760_s20  }
 0x105   : > { %752 = vmatpush1.bf16.msra.mxu1 %v1455_v13  ;;  %s2616_s30 = sld [smem:[#allocation45_spill]]  ;;  %s2617_s2 = sld [smem:[#allocation48_spill]] }
 0x106   : > { %753 = vmatprep.subr.bf16.mxu1 %v1456_v14  ;;  %s575_s9 = sld [smem:[#allocation3 + %s2615_s24]]  ;;  %s1180_s19 = sshll.u32 %s2384_s21, 4  ;;  %v698_v33 = vsub.s32 0, %v697_v32  ;;  %v702_v36 = vsub.s32 1, %v697_v32 }
 0x107   : > { %1231 = vmatpush3.bf16.msra.mxu0 %v1442_v3  ;;  %s586_s7 = sld [smem:[#allocation3 + %s2615_s24]]  ;;  %s556_s0 = scalar_lea.vmem [#allocation12], %s1180_s19 }
 0x108   : > { %1232 = vmatprep.subr.bf16.mxu0 %v1835_v0  ;;  %s2618_s8 = sld [smem:[#allocation49_spill]]  ;;  %s917_s5 = sshll.u32 %s556_s0, 4  ;;  %s2399_s5 = int_to_ptr.vmem [resolvable:$true] %s917_s5 }
 0x109   : > { %754 = vmatpush1.bf16.msra.mxu1 %v1461_v17  ;;  %s2620_s11 = sld [smem:[#allocation39_spill]]  ;;  %s896_s27 = scalar_lea.sflag [#allocation6], %s2384_s21 }
 0x10a   : > { %755 = vmatprep.subr.bf16.mxu1 %v1462_v18  ;;  %p567_p6 = scmp.lt.s32.totalorder %s566_s18, 1  ;;  %s1600_s15 = scalar_lea.vmem %s2399_s5, 256 }
 0x10b   : > { %1233 = vmatpush3.bf16.msra.mxu0 %v1443_v4  ;;  %p1601_p10 = scmp.ne.s32.totalorder %s2399_s5, %s1600_s15 }
 0x10c   : > { %850 = vmatprep.subr.bf16.mxu0 %v1448_v7  ;;  %s2671_s18 = smov (!%p567_p6, %s566_s18), 1  ;;  %p577_p7 = scmp.lt.s32.totalorder %s575_s9, 1 }
 0x10d   : > { %756 = vmatpush1.bf16.msra.mxu1 %v1467_v21  ;;  %s569_s29 = scalar_lea.vmem %s2616_s30, %s2671_s18  ;;  %p588_p11 = scmp.lt.s32.totalorder %s586_s7, 1 }
 0x10e   : > { %1235 = vmatmul.mubr.msk.bf16.vlgmr.msra.gmra.mrb[0].mxu0 %vm640_vm1, %v600_v5  ;;  %v1184_v23 = vld [vmem:[%s569_s29] ss:$0 sm:$0xff]  ;;  %s2673_s9 = smov (!%p577_p7, %s575_s9), 1  ;;  %s1219_s18 = sshll.u32 %s2615_s24, 8 }
 0x10f   : > { %851 = vmatpush1.bf16.msra.mxu0 %v1446_v8  ;;  %882 = vmatprep.mubr.bf16.mxu0 %v1837_v22  ;;  %s2675_s7 = smov (!%p588_p11, %s586_s7), 1  ;;  %s1182_s4 = sshll.u32 %s2673_s9, 1 }
 0x110   : > { %852 = vmatprep.subr.bf16.mxu0 %v1454_v11  ;;  %s1183_s16 = sshll.u32 %s2675_s7, 1  ;;  %s583_s12 = scalar_lea.vmem %s2617_s2, %s1182_s4 }
 0x111   : > { %s594_s17 = scalar_lea.vmem %s2618_s8, %s1183_s16  ;;  %v694_v34 = vld [vmem:[%s583_s12] sm:$0x3]  ;;  %s563_s30 = scalar_lea.vmem [#allocation13], %s1180_s19 }
 0x112   : > { %v798_v35 = vld [vmem:[%s594_s17] sm:$0x3]  ;;  %v699_v37 = vrot.slane %v694_v34, %v698_v33  ;;  %v703_v39 = vrot.slane %v694_v34, %v702_v36  ;;  %s933_s29 = sshll.u32 %s563_s30, 4  ;;  %s2619_s4 = sld [smem:[#allocation50_spill]]  ;;  %s2406_s29 = int_to_ptr.vmem [resolvable:$true] %s933_s29 }
 0x113   : > { %853 = vmatpush1.bf16.msra.mxu0 %v1452_v12  ;;  %v803_v38 = vrot.slane %v798_v35, %v698_v33  ;;  %v807_v40 = vrot.slane %v798_v35, %v702_v36  ;;  %s2621_s2 = sld [smem:[#allocation51_spill]]  ;;  %p2622_p9 = scmp.ne.s32.totalorder %s2620_s11, 0 }
 0x114   : > { %854 = vmatprep.subr.bf16.mxu0 %v1460_v15  ;;  %s1838_s8 = smov [#allocation12]  }
 0x115   : > { %p1602_p13 = pnand %p1601_p10, %p2622_p9  ;;  %s1604_s17 = sshll.u32 %s1838_s8, 4  ;;  %s1605_s17 = int_to_ptr.vmem [resolvable:$false] %s1604_s17 }
 0x116   : > { %s1606_s19 = scalar_lea.vmem %s1605_s17, 512  ;;  %p1607_p5 = scmp.lt.s32.totalorder %s2399_s5, %s1605_s17 }
 0x117   : > { %855 = vmatpush1.bf16.msra.mxu0 %v1458_v16  ;;  %p1603_p4 = pneg %p1602_p13  ;;  %p1608_p1 = scmp.lt.s32.totalorder %s1606_s19, %s1600_s15 }
 0x118   : > { %856 = vmatprep.subr.bf16.mxu0 %v1466_v19  ;;  %s2397_s16 = scalar_lea.hbm %s2619_s4, %s1219_s18 }
 0x119   : > { %s2404_s12 = scalar_lea.hbm %s2621_s2, %s1219_s18  ;;  %p1609_p3 = por %p1608_p1, %p1607_p5 }
 0x11b   : > { %857 = vmatpush1.bf16.msra.mxu0 %v1464_v20  ;;  %p1610_p8 = pnand %p1609_p3, %p1603_p4 }
 0x1e1   : > { %v678_v24 = vpop.f32.mrb[0].mxu0 }
 0x1e2   : > { %v679_v25 = vadd.f32 %v1184_v23, %v678_v24  ;;  %v1236_v26 = vpop.f32.mrb[1].mxu0 }
 0x1e3   : > { %v681_v27 = vpop.f32.mrb[2].mxu0 }
 0x1e4   : > { %1468 = vtanh.f32 %v679_v25  ;;  %v1237_v28 = vpop.f32.mrb[3].mxu0 }
 0x1ee   : > { %v1469_v29 = vpop.eup %1468 }
 0x1ef   : > { %v685_v30 = vpack.c.bf16 %v1469_v29, %v1469_v29 }
 0x1f1   : > { %1198 = vmatmul.mubr.msk.bf16.vlgmr.msra.gmra.mrb[0].mxu1 %vm640_vm1, %v685_v30  ;;  %1207 = vmatmul.mubr.msk.bf16.vlgmr.msra.gmra.mrb[4].mxu0 %vm640_vm1, %v685_v30 }
 0x2c4   : > { %v783_v41 = vpop.f32.mrb[0].mxu1  ;;  %v884_v42 = vpop.f32.mrb[4].mxu0 }
 0x2c5   : > { %v784_v43 = vadd.f32 %v783_v41, %v699_v37  ;;  %v885_v44 = vadd.f32 %v884_v42, %v803_v38  ;;  %v785_v45 = vpop.f32.mrb[1].mxu1  ;;  %v886_v46 = vpop.f32.mrb[5].mxu0 }
 0x2c6   : > { %v786_v47 = vadd.f32 %v785_v45, %v703_v39  ;;  %v887_v48 = vadd.f32 %v886_v46, %v807_v40  ;;  %v787_v49 = vpop.f32.mrb[2].mxu1  ;;  %v888_v50 = vpop.f32.mrb[6].mxu0 }
 0x2c7   : > { %891 = vst [vmem:[%s556_s0] sm:$0xff] %v784_v43  ;;  %893 = vst [vmem:[%s563_s30] sm:$0xff] %v885_v44  ;;  %v788_v51 = vpop.f32.mrb[3].mxu1  ;;  %v889_v52 = vpop.f32.mrb[7].mxu0 }
 0x2c8   : > { %892 = vst [vmem:[%s556_s0 + $0x8] sm:$0xff] %v786_v47  ;;  %894 = vst [vmem:[%s563_s30 + $0x8] sm:$0xff] %v887_v48 }
 0x2c9   : > { %1613 = shalt.err (!%p1610_p8)
}
 0x2ca   : > { %s1614_s18 = scalar_lea.hbm %s2397_s16, 256  ;;  %s1618_s9 = scalar_lea.hbm %s2619_s4, 512 }
 0x2cb   : > { %p1615_p12 = scmp.ne.s32.totalorder %s2397_s16, %s1614_s18  ;;  %p1619_p6 = scmp.lt.u32.totalorder %s2397_s16, %s2619_s4 }
 0x2cc   : > { %p1620_p7 = scmp.lt.u32.totalorder %s1618_s9, %s1614_s18  ;;  %p1622_p10 = scmp.lt.u32.totalorder %s1614_s18, %s2397_s16 }
 0x2cd   : > { %p1616_p2 = pnand %p1615_p12, %p2622_p9 }
 0x2ce   : > { %p1621_p11 = por %p1620_p7, %p1619_p6 }
 0x2cf   : > { %p1617_p0 = pneg %p1616_p2 }
 0x2d0   : > { %p1623_p13 = por %p1622_p10, %p1621_p11 }
 0x2d2   : > { %p1624_p4 = pnand %p1623_p13, %p1617_p0 }
 0x2d4   : > { %1627 = shalt.err (!%p1624_p4)
}
 0x2d5   : > { %1254 = dma.vmem_to_hbm [thread:$0]  (%p2622_p9), %s2399_s5, 256, %s2397_s16, %s896_s27  }
 0x2d6   : > { %s901_s3 = scalar_lea.sflag [#allocation14], %s2384_s21  ;;  %s1628_s15 = scalar_lea.vmem %s2406_s29, 256 }
 0x2d7   : > { %p1629_p5 = scmp.ne.s32.totalorder %s2406_s29, %s1628_s15  ;;  %s1839_s8 = smov [#allocation13]  }
 0x2d8   : > { %s1632_s17 = sshll.u32 %s1839_s8, 4  ;;  %s1633_s17 = int_to_ptr.vmem [resolvable:$false] %s1632_s17 }
 0x2d9   : > { %p1630_p1 = pnand %p1629_p5, %p2622_p9  ;;  %s1634_s19 = scalar_lea.vmem %s1633_s17, 512 }
 0x2da   : > { %p1635_p8 = scmp.lt.s32.totalorder %s2406_s29, %s1633_s17  ;;  %p1636_p12 = scmp.lt.s32.totalorder %s1634_s19, %s1628_s15 }
 0x2db   : > { %p1631_p3 = pneg %p1630_p1 }
 0x2dc   : > { %p1637_p2 = por %p1636_p12, %p1635_p8 }
 0x2de   : > { %p1638_p0 = pnand %p1637_p2, %p1631_p3 }
 0x2e0   : > { %1641 = shalt.err (!%p1638_p0)
}
 0x2e1   : > { %s1642_s21 = scalar_lea.hbm %s2404_s12, 256  ;;  %s1646_s27 = scalar_lea.hbm %s2621_s2, 512 }
 0x2e2   : > { %p1643_p6 = scmp.ne.s32.totalorder %s2404_s12, %s1642_s21  ;;  %p1647_p10 = scmp.lt.u32.totalorder %s2404_s12, %s2621_s2 }
 0x2e3   : > { %p1648_p13 = scmp.lt.u32.totalorder %s1646_s27, %s1642_s21  ;;  %p1650_p5 = scmp.lt.u32.totalorder %s1642_s21, %s2404_s12 }
 0x2e4   : > { %p1644_p7 = pnand %p1643_p6, %p2622_p9 }
 0x2e5   : > { %p1649_p4 = por %p1648_p13, %p1647_p10 }
 0x2e6   : > { %p1645_p11 = pneg %p1644_p7 }
 0x2e7   : > { %p1651_p1 = por %p1650_p5, %p1649_p4 }
 0x2e9   : > { %p1652_p3 = pnand %p1651_p1, %p1645_p11 }
 0x2eb   : > { %1655 = shalt.err (!%p1652_p3)
}
 0x2ec   : > { %1255 = dma.vmem_to_hbm [thread:$0]  (%p2622_p9), %s2406_s29, 256, %s2404_s12, %s901_s3  }
 0x2ed PF: > { %s2623_s30 = sld [smem:[#allocation30_spill]]  ;;  %s2624_s9 = sld [smem:[#allocation40_spill]] }
 0x2ee   : > { %p2626_p12 = scmp.ge.s32.totalorder %s1824_s14, 2 }
 0x2f3   : > { %s945_s7 = sand.u32 1, %s2623_s30   ;;  %p2625_p8 = scmp.ne.s32.totalorder %s2624_s9, 0 }
 0x2f4   : > { %s946_s24 = scalar_lea.sflag [#allocation6], %s945_s7 }
 0x2f5   : > { %p1280_p2 = pnand %p2626_p12, %p2625_p8 }
 0x2f7   : > { %1747 = dma.done.wait (!%p1280_p2), %s946_s24, 256  }
 0x2f8   : > { %1749 = vsyncadd (!%p1280_p2), %s946_s24, 4294967040  ;;  %s955_s15 = scalar_lea.sflag [#allocation14], %s945_s7 }
 0x2f9   : > { %1751 = dma.done.wait (!%p1280_p2), %s955_s15, 256  }
 0x2fa   : > { %1753 = vsyncadd (!%p1280_p2), %s955_s15, 4294967040  ;;  %s39_s14 = sadd.s32 1, %s1824_s14   ;;  %s2628_s29 = sld [smem:[#allocation31_spill]] }
 0x2fb   : > { %p2458_p0 = scmp.ge.s32.totalorder %s39_s14, 4   ;;  %s2629_s21 = sld [smem:[#allocation38_spill]] }
 0x2fc   : > { %s2630_s27 = sld [smem:[#allocation32_spill]]  ;;  %s2631_s12 = sld [smem:[#allocation33_spill]] }
 0x2fd   : > { %s2632_s3 = sld [smem:[#allocation41_spill]]  ;;  %s2633_s8 = sld [smem:[#allocation34_spill]] }
 0x2fe   : > { %s2634_s17 = sld [smem:[#allocation42_spill]]  ;;  %s2635_s19 = smov %s1760_s20 }
 0x2ff   : > { %s2636_s5 = sld [smem:[#allocation36_spill]]  ;;  %s2639_s0 = smov %s1772_s22 }
 0x300   : > { %s2637_s20 = smov %s2628_s29  ;;  %s2640_s22 = smov %s1776_s23 }
 0x301   : > { %s2641_s23 = smov %s2281_s1  ;;  %s2642_s24 = smov %s1784_s25 }
 0x302   : > { %s2643_s25 = smov %s1788_s26  ;;  %s2644_s26 = smov %s2196_s28 }
 0x303   : > { %s2645_s28 = smov %s2631_s12  ;;  %s2646_s29 = smov %s2632_s3 }
 0x304   : > { %s2647_s30 = smov %s1808_s10  ;;  %s2648_s10 = smov %s2633_s8 }
 0x305   : > { %s2649_s11 = smov %s2634_s17  ;;  %s2650_s12 = smov %s1820_s13 }
 0x306   : > { %s2651_s13 = smov %s2636_s5  ;;  %38 = sbr.rel (!%p2458_p0) target bundleno = 34 (0x22), region = 156 }
 0x30d   :  { %960 = vsyncpa [#allocation5], 1 }
 0x30e   :  { %962 = vsyncpa [#allocation5 + $0x1], 1 }
 0x30f   :  { %963 = vsyncpa [#allocation8], 1 }
 0x310   :  { %965 = vsyncpa [#allocation8 + $0x1], 1 }
 0x311   :  { %966 = vsyncpa [#allocation11], 1 }
 0x312   :  { %968 = vsyncpa [#allocation11 + $0x1], 1 }
 0x313   :  { %969 = vsyncpa [#allocation6], 1 }
 0x314   :  { %971 = vsyncpa [#allocation6 + $0x1], 1 }
 0x315   :  { %972 = vsyncpa [#allocation14], 1 }
 0x316   :  { %974 = vsyncpa [#allocation14 + $0x1], 1 }

</bundles_post_ra>
